<compile_context>
chip_gen: v7x
topology: tpu7x:2x2x1
jax: 0.10.0
libtpu: 0.0.40
codegen_flags: <defaults>
</compile_context>

<pallas_src>
import jax
import jax.numpy as jnp
from jax.experimental import pallas as pl
from jax.experimental.pallas import tpu as pltpu

_LANE = 128      # lane width: batch tile must be a multiple of this
_MAX_TB = 512    # batch-tile size (columns per grid step)


def _mlp_kernel(xt_ref, w1_ref, b1_ref, w2_ref, b2_ref, w3_ref, b3_ref, o_ref):
    """Fused sigmoid(W3 @ sigmoid(W2 @ sigmoid(W1 @ x^T + b1) + b2) + b3)."""
    xt = xt_ref[...].astype(jnp.float32)                                   # [F, TB]
    h1 = jax.nn.sigmoid(
        jnp.dot(w1_ref[...], xt, preferred_element_type=jnp.float32) + b1_ref[...])
    h2 = jax.nn.sigmoid(
        jnp.dot(w2_ref[...], h1, preferred_element_type=jnp.float32) + b2_ref[...])
    h3 = jnp.dot(w3_ref[...], h2, preferred_element_type=jnp.float32) + b3_ref[...]
    o_ref[...] = jax.nn.sigmoid(h3).astype(o_ref.dtype)                    # [OUT, TB]


@jax.jit
def simple_nn_1(x, w1, b1, w2, b2, w3, b3):
    """x: [B, input_size] f32; weights [out, in]; biases [out, 1] -> [B, out] f32."""
    B, F = x.shape
    H1 = w1.shape[0]
    H2 = w2.shape[0]
    OUT = w3.shape[0]

    # Lane-aligned, tile-aligned padded batch.
    B_pad = max(_LANE, pl.cdiv(B, _LANE) * _LANE)
    TB = min(_MAX_TB, B_pad)
    B_pad = pl.cdiv(B_pad, TB) * TB
    grid = (B_pad // TB,)

    # Batch-on-lanes input, streamed as bf16 (dominant HBM traffic halved).
    xt = jnp.pad(x.astype(jnp.bfloat16).T, ((0, 0), (0, B_pad - B)))       # [F, B_pad]

    resident = lambda i: (0, 0)   # weights/biases stay resident in VMEM across the grid

    cost = pl.CostEstimate(
        flops=2 * B_pad * (F * H1 + H1 * H2 + H2 * OUT),
        transcendentals=B_pad * (H1 + H2 + OUT),
        bytes_accessed=(xt.size * xt.dtype.itemsize
                        + 4 * (w1.size + b1.size + w2.size + b2.size + w3.size + b3.size)
                        + 4 * OUT * B_pad),
    )

    out_t = pl.pallas_call(
        _mlp_kernel,
        out_shape=jax.ShapeDtypeStruct((OUT, B_pad), jnp.float32),
        grid=grid,
        in_specs=[
            pl.BlockSpec((F, TB), lambda i: (0, i)),   # x^T: tiled along batch/lanes
            pl.BlockSpec((H1, F), resident),
            pl.BlockSpec((H1, 1), resident),
            pl.BlockSpec((H2, H1), resident),
            pl.BlockSpec((H2, 1), resident),
            pl.BlockSpec((OUT, H2), resident),
            pl.BlockSpec((OUT, 1), resident),
        ],
        out_specs=pl.BlockSpec((OUT, TB), lambda i: (0, i)),   # lane-dense output
        compiler_params=pltpu.CompilerParams(
            dimension_semantics=("parallel",),          # megacore-shardable on v7x
            vmem_limit_bytes=32 * 1024 * 1024,          # explicit, fits v7x's 64 MiB VMEM
        ),
        cost_estimate=cost,
    )(xt, w1, b1, w2, b2, w3, b3)

    return out_t[:, :B].T                               # back to [B, OUT]


def _init_linear(key, fan_in, fan_out):
    """PyTorch nn.Linear default init: U(-1/sqrt(fan_in), 1/sqrt(fan_in))."""
    kw, kb = jax.random.split(key)
    bound = 1.0 / jnp.sqrt(jnp.float32(fan_in))
    w = jax.random.uniform(kw, (fan_out, fan_in), jnp.float32, -bound, bound)  # [out, in]
    b = jax.random.uniform(kb, (fan_out, 1), jnp.float32, -bound, bound)       # [out, 1]
    return w, b


def reference_forward(x, w1, b1, w2, b2, w3, b3, *, bf16_inputs=True):
    xx = x.astype(jnp.bfloat16).astype(jnp.float32) if bf16_inputs else x
    h = jax.nn.sigmoid(xx @ w1.T + b1.T)
    h = jax.nn.sigmoid(h @ w2.T + b2.T)
    return jax.nn.sigmoid(h @ w3.T + b3.T)


if __name__ == "__main__":
    # Sizes implied by the module: input_size = #features after get_dummies
    # (small synthetic value), hidden_size1 = 8, hidden_size2 = 4, output_size = 1.
    input_size, hidden_size1, hidden_size2, output_size = 12, 8, 4, 1

    key = jax.random.PRNGKey(0)
    kx, k1, k2, k3, kx2 = jax.random.split(key, 5)

    w1, b1 = _init_linear(k1, input_size, hidden_size1)
    w2, b2 = _init_linear(k2, hidden_size1, hidden_size2)
    w3, b3 = _init_linear(k3, hidden_size2, output_size)

    # Small batch (single grid step).
    batch = 8
    x = jax.random.normal(kx, (batch, input_size), jnp.float32)
    out = jax.block_until_ready(simple_nn_1(x, w1, b1, w2, b2, w3, b3))
    assert out.shape == (batch, output_size)
    ref_bf16 = reference_forward(x, w1, b1, w2, b2, w3, b3, bf16_inputs=True)
    ref_f32 = reference_forward(x, w1, b1, w2, b2, w3, b3, bf16_inputs=False)
    assert jnp.allclose(out, ref_bf16, atol=1e-4, rtol=1e-4)
    assert jnp.allclose(out, ref_f32, atol=2e-2, rtol=2e-2)

    # Ragged, larger batch: exercises padding + multi-step pipelined grid.
    batch2 = 1037
    x2 = jax.random.normal(kx2, (batch2, input_size), jnp.float32)
    out2 = jax.block_until_ready(simple_nn_1(x2, w1, b1, w2, b2, w3, b3))
    assert out2.shape == (batch2, output_size)
    ref2 = reference_forward(x2, w1, b1, w2, b2, w3, b3, bf16_inputs=True)
    assert jnp.allclose(out2, ref2, atol=1e-4, rtol=1e-4)

    print("KERNEL_OK")
</pallas_src>

<mosaic_0001>
module attributes {stable_mosaic.version = 11 : i64} {
  func.func @_mlp_kernel(%arg0: i32, %arg1: memref<12x128xbf16, #tpu.memory_space<vmem>>, %arg2: memref<8x12xf32, #tpu.memory_space<vmem>>, %arg3: memref<8x1xf32, #tpu.memory_space<vmem>>, %arg4: memref<4x8xf32, #tpu.memory_space<vmem>>, %arg5: memref<4x1xf32, #tpu.memory_space<vmem>>, %arg6: memref<1x4xf32, #tpu.memory_space<vmem>>, %arg7: memref<1x1xf32, #tpu.memory_space<vmem>>, %arg8: memref<1x128xf32, #tpu.memory_space<vmem>>) attributes {dimension_semantics = [#tpu.dimension_semantics<parallel>], iteration_bounds = array<i64: 1>, scalar_prefetch = 0 : i64, scratch_operands = 0 : i64, tpu.core_type = #tpu.core_type<tc>, window_params = [{transform_indices = @transform_0, window_bounds = array<i64: 12, 128>}, {pipeline_mode = #tpu.pipeline_mode<synchronous>, transform_indices = @transform_1, window_bounds = array<i64: 8, 12>}, {pipeline_mode = #tpu.pipeline_mode<synchronous>, transform_indices = @transform_2, window_bounds = array<i64: 8, 1>}, {pipeline_mode = #tpu.pipeline_mode<synchronous>, transform_indices = @transform_3, window_bounds = array<i64: 4, 8>}, {pipeline_mode = #tpu.pipeline_mode<synchronous>, transform_indices = @transform_4, window_bounds = array<i64: 4, 1>}, {pipeline_mode = #tpu.pipeline_mode<synchronous>, transform_indices = @transform_5, window_bounds = array<i64: 1, 4>}, {pipeline_mode = #tpu.pipeline_mode<synchronous>, transform_indices = @transform_6, window_bounds = array<i64: 1, 1>}, {transform_indices = @transform_7, window_bounds = array<i64: 1, 128>}]} {
    %c0 = arith.constant 0 : index
    %c0_0 = arith.constant 0 : index
    %0 = vector.load %arg1[%c0, %c0_0] : memref<12x128xbf16, #tpu.memory_space<vmem>>, vector<12x128xbf16>
    %1 = arith.extf %0 : vector<12x128xbf16> to vector<12x128xf32>
    %c0_1 = arith.constant 0 : index
    %c0_2 = arith.constant 0 : index
    %2 = vector.load %arg2[%c0_1, %c0_2] : memref<8x12xf32, #tpu.memory_space<vmem>>, vector<8x12xf32>
    %cst = arith.constant dense<0.000000e+00> : vector<8x128xf32>
    %3 = tpu.matmul %2, %1, %cst {dimension_numbers = #tpu.dot_dimension_numbers<[1], [0], [0], [1], [0, 0, 1, 1], [], []>} : vector<8x12xf32>, vector<12x128xf32>, vector<8x128xf32> -> vector<8x128xf32>
    %c0_3 = arith.constant 0 : index
    %c0_4 = arith.constant 0 : index
    %4 = vector.load %arg3[%c0_3, %c0_4] : memref<8x1xf32, #tpu.memory_space<vmem>>, vector<8x1xf32>
    %5 = vector.broadcast %4 : vector<8x1xf32> to vector<8x128xf32>
    %6 = arith.addf %3, %5 : vector<8x128xf32>
    %7 = arith.negf %6 : vector<8x128xf32>
    %8 = math.exp %7 : vector<8x128xf32>
    %cst_5 = arith.constant 1.000000e+00 : f32
    %9 = vector.broadcast %cst_5 : f32 to vector<8x128xf32>
    %10 = arith.addf %9, %8 : vector<8x128xf32>
    %11 = arith.divf %9, %10 : vector<8x128xf32>
    %c0_6 = arith.constant 0 : index
    %c0_7 = arith.constant 0 : index
    %12 = vector.load %arg4[%c0_6, %c0_7] : memref<4x8xf32, #tpu.memory_space<vmem>>, vector<4x8xf32>
    %cst_8 = arith.constant dense<0.000000e+00> : vector<4x128xf32>
    %13 = tpu.matmul %12, %11, %cst_8 {dimension_numbers = #tpu.dot_dimension_numbers<[1], [0], [0], [1], [0, 0, 1, 1], [], []>} : vector<4x8xf32>, vector<8x128xf32>, vector<4x128xf32> -> vector<4x128xf32>
    %c0_9 = arith.constant 0 : index
    %c0_10 = arith.constant 0 : index
    %14 = vector.load %arg5[%c0_9, %c0_10] : memref<4x1xf32, #tpu.memory_space<vmem>>, vector<4x1xf32>
    %15 = vector.broadcast %14 : vector<4x1xf32> to vector<4x128xf32>
    %16 = arith.addf %13, %15 : vector<4x128xf32>
    %17 = arith.negf %16 : vector<4x128xf32>
    %18 = math.exp %17 : vector<4x128xf32>
    %cst_11 = arith.constant 1.000000e+00 : f32
    %19 = vector.broadcast %cst_11 : f32 to vector<4x128xf32>
    %20 = arith.addf %19, %18 : vector<4x128xf32>
    %21 = arith.divf %19, %20 : vector<4x128xf32>
    %c0_12 = arith.constant 0 : index
    %c0_13 = arith.constant 0 : index
    %22 = vector.load %arg6[%c0_12, %c0_13] : memref<1x4xf32, #tpu.memory_space<vmem>>, vector<1x4xf32>
    %cst_14 = arith.constant dense<0.000000e+00> : vector<1x128xf32>
    %23 = tpu.matmul %22, %21, %cst_14 {dimension_numbers = #tpu.dot_dimension_numbers<[1], [0], [0], [1], [0, 0, 1, 1], [], []>} : vector<1x4xf32>, vector<4x128xf32>, vector<1x128xf32> -> vector<1x128xf32>
    %c0_15 = arith.constant 0 : index
    %c0_16 = arith.constant 0 : index
    %24 = vector.load %arg7[%c0_15, %c0_16] : memref<1x1xf32, #tpu.memory_space<vmem>>, vector<1x1xf32>
    %25 = vector.broadcast %24 : vector<1x1xf32> to vector<1x128xf32>
    %26 = arith.addf %23, %25 : vector<1x128xf32>
    %27 = arith.negf %26 : vector<1x128xf32>
    %28 = math.exp %27 : vector<1x128xf32>
    %cst_17 = arith.constant 1.000000e+00 : f32
    %29 = vector.broadcast %cst_17 : f32 to vector<1x128xf32>
    %30 = arith.addf %29, %28 : vector<1x128xf32>
    %31 = arith.divf %29, %30 : vector<1x128xf32>
    %c0_18 = arith.constant 0 : index
    %c0_19 = arith.constant 0 : index
    %32 = vector.load %arg8[%c0_18, %c0_19] : memref<1x128xf32, #tpu.memory_space<vmem>>, vector<1x128xf32>
    tpu.vector_store %arg8[%c0_18, %c0_19], %31 {strides = array<i32>} : memref<1x128xf32, #tpu.memory_space<vmem>>, vector<1x128xf32>,
    return
  }
  func.func @transform_0(%arg0: i32) -> (i32, i32) {
    %c0_i32 = arith.constant 0 : i32
    %c0_i32_0 = arith.constant 0 : i32
    return %c0_i32, %arg0 : i32, i32
  }
  func.func @transform_1(%arg0: i32) -> (i32, i32) {
    %c0_i32 = arith.constant 0 : i32
    %c0_i32_0 = arith.constant 0 : i32
    %c0_i32_1 = arith.constant 0 : i32
    return %c0_i32, %c0_i32_0 : i32, i32
  }
  func.func @transform_2(%arg0: i32) -> (i32, i32) {
    %c0_i32 = arith.constant 0 : i32
    %c0_i32_0 = arith.constant 0 : i32
    %c0_i32_1 = arith.constant 0 : i32
    return %c0_i32, %c0_i32_0 : i32, i32
  }
  func.func @transform_3(%arg0: i32) -> (i32, i32) {
    %c0_i32 = arith.constant 0 : i32
    %c0_i32_0 = arith.constant 0 : i32
    %c0_i32_1 = arith.constant 0 : i32
    return %c0_i32, %c0_i32_0 : i32, i32
  }
  func.func @transform_4(%arg0: i32) -> (i32, i32) {
    %c0_i32 = arith.constant 0 : i32
    %c0_i32_0 = arith.constant 0 : i32
    %c0_i32_1 = arith.constant 0 : i32
    return %c0_i32, %c0_i32_0 : i32, i32
  }
  func.func @transform_5(%arg0: i32) -> (i32, i32) {
    %c0_i32 = arith.constant 0 : i32
    %c0_i32_0 = arith.constant 0 : i32
    %c0_i32_1 = arith.constant 0 : i32
    return %c0_i32, %c0_i32_0 : i32, i32
  }
  func.func @transform_6(%arg0: i32) -> (i32, i32) {
    %c0_i32 = arith.constant 0 : i32
    %c0_i32_0 = arith.constant 0 : i32
    %c0_i32_1 = arith.constant 0 : i32
    return %c0_i32, %c0_i32_0 : i32, i32
  }
  func.func @transform_7(%arg0: i32) -> (i32, i32) {
    %c0_i32 = arith.constant 0 : i32
    %c0_i32_0 = arith.constant 0 : i32
    return %c0_i32, %arg0 : i32, i32
  }
}

</mosaic_0001>

<bundles_post_ra>
// kernel: simple_nn_1.1
= control target key start
LH: loop header
LB: loop body
LE: loop exit
PB: predicated region body
PF: predicated region fallthrough
CT: control target
= control target key end

     0   :  { %vm43_vm0 = vcmask 1043456   ;;  %v366_v0 = vmov 0.0|0.0   ;;  %vm367_vm1 = vmmov 1   ;;  %vm368_vm3 = vmmov 0   ;;  %s440_s0 = inlined_call_operand.vmem [shape: bf16[12,128], index: 0, kind: input, shape index: {}]   ;;  %s441_s1 = inlined_call_operand.vmem [shape: f32[8,12], index: 1, kind: input, shape index: {}]   ;;  %s442_s2 = inlined_call_operand.vmem [shape: f32[8,1], index: 2, kind: input, shape index: {}]   ;;  %s443_s4 = inlined_call_operand.vmem [shape: f32[4,1], index: 4, kind: input, shape index: {}]   ;;  %s444_s3 = inlined_call_operand.vmem [shape: f32[4,8], index: 3, kind: input, shape index: {}]   ;;  %s445_s6 = inlined_call_operand.<no memory space> [shape: f32[1,1], index: 6, kind: input, shape index: {}]   ;;  %s446_s5 = inlined_call_operand.vmem [shape: f32[1,4], index: 5, kind: input, shape index: {}]   ;;  %s447_s7 = inlined_call_operand.vmem [shape: f32[1,128], index: 7, kind: output, shape index: {}]  }
   0x1   :  { %341 = vmatprep.subr.bf16.mxu0 %v366_v0  ;;  %v353_v1 = vld [vmem:[%s440_s0] sm:$0x3f]   ;;  %vm343_vm2 = vmpackc.low %vm43_vm0, %vm367_vm1  ;;  %v369_v3 = vmov 0.0   ;;  %vm39_vm4 = vcmask 97280   ;;  %v370_v5 = vmov 0   ;;  %vm130_vm5 = vcmask 64512  }
   0x2   :  { %v33_v2 = vld [vmem:[%s442_s2] sm:$0xff]  ;;  %344 = vmatpush3.bf16.msk.msra.mxu0 %vm343_vm2, %v353_v1  ;;  %328 = vmatprep.mubr.msk.f32.mxu0 %vm368_vm3, %v369_v3  ;;  %v12_v16 = vstv %s445_s6  ;;  %vm221_vm6 = vcmask 31744   ;;  %v217_v27 = vlaneseq }
   0x3   :  { %v32_v4 = vld [vmem:[%s441_s1] sm:$0xff]  ;;  %351 = vset.pattern.permute.xlu0 %v370_v5  ;;  %331 = vmatprep.subr.mxu1 %v369_v3  ;;  %13 = vst [vmem:[#allocation2] sm:$0x1] %v12_v16 }
   0x4   :  { %36 = vperm.xlu0 %351, %v33_v2   ;;  %333 = vmatprep.mubr.msk.f32.mxu1 %vm368_vm3, %v369_v3  ;;  %v124_v6 = vld [vmem:[%s443_s4] sm:$0xf]  ;;  %v218_v28 = vshrl.u32 %v217_v27, 7 }
   0x5   :  { %329 = vmatmul.mubr.msk.f32.vlgmr.msra.gmra.mrb[0].mxu0 %vm39_vm4, %v32_v4  ;;  %352 = vset.pattern.permute.xlu1 %v370_v5  ;;  %v123_v14 = vld [vmem:[%s444_s3] sm:$0xf] }
   0x6   :  { %v210_v25 = vld [vmem:[%s446_s5] sm:$0x1]  ;;  %v219_v29 = vsub.s32 0, %v218_v28 }
   0x8   :  { %127 = vperm.xlu0 %351, %v124_v6  }
   0xa   :  { %v211_v17 = vld [vmem:[#allocation2] sm:$0x1] }
   0xb   :  { %214 = vperm.xlu1 %352, %v211_v17  }
  0x83   :  { %v37_v7 = vpop.permute.xlu0 %36 }
  0x87   :  { %v128_v18 = vpop.permute.xlu0 %127 }
  0x8a   :  { %v215_v30 = vpop.permute.xlu1 %214 }
  0x8b   :  { %v220_v31 = vrot.slane %v215_v30, %v219_v29 }
  0xd8   :  { %v113_v8 = vpop.f32.mrb[0].mxu0 }
  0xd9   :  { %v114_v9 = vadd.f32 %v113_v8, %v37_v7  ;;  %v330_v10 = vpop.f32.mrb[1].mxu0 }
  0xdb   :  { %v311_v11 = vmul.f32 -1.442695, %v114_v9 }
  0xdd   :  { %354 = vpow2.f32 %v311_v11 }
  0xe7   :  { %v355_v12 = vpop.eup %354 }
  0xe8   :  { %v120_v13 = vadd.f32 1.0, %v355_v12 }
  0xea   :  { %356 = vrcp.f32 %v120_v13 }
  0xf4   :  { %v357_v15 = vpop.eup %356 }
  0xf5   :  { %332 = vmatpush3.msra.mxu1 %v357_v15 }
  0xf6   :  { %334 = vmatmul.mubr.msk.f32.vlgmr.msra.gmra.mrb[0].mxu1 %vm130_vm5, %v123_v14  ;;  %336 = vmatprep.subr.mxu1 %v369_v3 }
  0xf7   :  { %338 = vmatprep.mubr.msk.f32.mxu1 %vm368_vm3, %v369_v3 }
 0x1c9   :  { %v200_v19 = vpop.f32.mrb[0].mxu1 }
 0x1ca   :  { %v201_v20 = vadd.f32 %v200_v19, %v128_v18  ;;  %v335_v21 = vpop.f32.mrb[1].mxu1 }
 0x1cc   :  { %v313_v22 = vmul.f32 -1.442695, %v201_v20 }
 0x1ce   :  { %358 = vpow2.f32 %v313_v22 }
 0x1d8   :  { %v359_v23 = vpop.eup %358 }
 0x1d9   :  { %v207_v24 = vadd.f32 1.0, %v359_v23 }
 0x1db   :  { %360 = vrcp.f32 %v207_v24 }
 0x1e5   :  { %v361_v26 = vpop.eup %360 }
 0x1e6   :  { %337 = vmatpush3.msk.msra.mxu1 %vm43_vm0, %v361_v26 }
 0x1e7   :  { %339 = vmatmul.mubr.msk.f32.vlgmr.msra.gmra.mrb[2].mxu1 %vm221_vm6, %v210_v25 }
 0x2ba   :  { %v294_v32 = vpop.f32.mrb[2].mxu1 }
 0x2bb   :  { %v295_v33 = vadd.f32 %v294_v32, %v220_v31  ;;  %v340_v34 = vpop.f32.mrb[3].mxu1 }
 0x2bd   :  { %v316_v35 = vmul.f32 -1.442695, %v295_v33 }
 0x2bf   :  { %362 = vpow2.f32 %v316_v35 }
 0x2c9   :  { %v363_v36 = vpop.eup %362 }
 0x2ca   :  { %v301_v37 = vadd.f32 1.0, %v363_v36 }
 0x2cc   :  { %364 = vrcp.f32 %v301_v37 }
 0x2d6   :  { %v365_v38 = vpop.eup %364 }
 0x2d7   :  { %304 = vst [vmem:[%s447_s7] sm:$0x1] %v365_v38 }

</bundles_post_ra>
